<compile_context>
chip_gen: v7x
topology: tpu7x:2x2x1
jax: 0.10.0
libtpu: 0.0.40
codegen_flags: <defaults>
</compile_context>

<pallas_src>
import numpy as np

import jax
import jax.numpy as jnp
from jax.experimental import pallas as pl
from jax.experimental.pallas import tpu as pltpu


# --------------------------- Pallas kernels ----------------------------------

def _refine_kernel(x_ref, w_ref, shift_ref, o_ref):
    # x_ref:     (cin, T)   channels on sublanes, pixels on lanes
    # w_ref:     (kd, cin)  1x1-conv weight with the BN scale folded in
    # shift_ref: (kd, 1)    folded BN shift
    # o_ref:     (kd, T)    lane-dense output (transfer dtype)
    y = jnp.dot(w_ref[...], x_ref[...], preferred_element_type=jnp.float32)
    o_ref[...] = jnp.maximum(y + shift_ref[...], 0.0).astype(o_ref.dtype)


def _make_fused_attn_kernel(shifts):
    """Fused dilated-3x3 unfold + softmax attention + aggregation.

    Works on the flat pixel axis (lanes).  For neighbour offset (dy, dx) the
    flat offset is s = dy*w + dx; `shifts` holds the static lane-roll amount
    for each of the 9 neighbours.  Validity masks come from rolling a (row,
    col) coordinate map with the *same* roll, so wrapped positions (which in
    the reference correspond to the zero padding of torch unfold) get energy 0
    and attention weight 0 — exactly the reference semantics.
    """

    def kernel(coords_ref, q_ref, k_ref, v_ref, o_ref):
        coords = coords_ref[...]                      # (2, HW) f32 (row, col)
        q = q_ref[...].astype(jnp.float32)            # (kd, HW)
        k = k_ref[...].astype(jnp.float32)            # (kd, HW)

        energies, conds = [], []
        for s in shifts:
            if s == 0:
                kr, cr = k, coords
            else:
                kr = pltpu.roll(k, s, 1)              # XLU lane rotation
                cr = pltpu.roll(coords, s, 1)
            d = cr - coords                           # (2, HW) neighbour deltas
            cond = (jnp.abs(d[0:1, :]) < 2.5) & (jnp.abs(d[1:2, :]) < 2.5)
            e_raw = jnp.sum(q * kr, axis=0, keepdims=True)      # (1, HW)
            energies.append(jnp.where(cond, e_raw, 0.0))        # OOB -> 0
            conds.append(cond)

        # numerically stable softmax over the 9 neighbours
        m = energies[0]
        for e in energies[1:]:
            m = jnp.maximum(m, e)
        ps = [jnp.exp(e - m) for e in energies]
        denom = ps[0]
        for p in ps[1:]:
            denom = denom + p
        inv = pl.reciprocal(denom, approx=True)       # EUP slot
        inv = inv * (2.0 - denom * inv)               # one Newton step -> ~f32 exact

        # weighted aggregation; accumulate straight into o_ref, first
        # neighbour initialises it (no zero-fill, no big register acc).
        vals = v_ref[...].astype(jnp.float32)         # (C, HW)
        for i, s in enumerate(shifts):
            att = jnp.where(conds[i], ps[i] * inv, 0.0)          # (1, HW)
            vr = vals if s == 0 else pltpu.roll(vals, s, 1)
            contrib = att * vr                                   # (C, HW)
            if i == 0:
                o_ref[...] = contrib
            else:
                o_ref[...] = o_ref[...] + contrib

    return kernel


# --------------------------- Pallas wrappers ----------------------------------

def _attention_vmem_limit():
    # v5e / v6e have 128 MiB VMEM -> allow ~100 MiB (deeper pipelining);
    # v7x only has 64 MiB -> stay near ~54 MiB.  Fallback: a safe 48 MiB.
    try:
        cap = pltpu.get_tpu_info().vmem_capacity_bytes
        return int(min(0.85 * cap, 100 * 1024 * 1024))
    except Exception:
        return 48 * 1024 * 1024


def refine_pallas(x_nchw, weight, gamma, beta, mean, var, eps=1e-5,
                  out_dtype=jnp.float32, max_tile=8192):
    """1x1 conv (no bias) + BatchNorm(eval) + ReLU.  Returns (n, kd, h*w)."""
    n, cin, h, w = x_nchw.shape
    kd = weight.shape[0]
    hw = h * w
    x = x_nchw.reshape(n, cin, hw)

    inv_std = gamma / jnp.sqrt(var + eps)
    w_folded = (weight * inv_std[:, None]).astype(jnp.float32)        # (kd, cin)
    shift = (beta - mean * inv_std).reshape(kd, 1).astype(jnp.float32)

    # Big lane-dense pixel tiles amortise per-step overhead; pl.cdiv grid with a
    # (Pallas-handled) ragged tail replaces the old "one giant block" fallback.
    T = hw if hw <= max_tile else max_tile
    grid = (n, pl.cdiv(hw, T))

    cost = pl.CostEstimate(
        flops=int(2 * n * hw * cin * kd),
        transcendentals=0,
        bytes_accessed=int(4 * (n * cin * hw + kd * cin + kd)
                           + jnp.dtype(out_dtype).itemsize * n * kd * hw),
    )
    return pl.pallas_call(
        _refine_kernel,
        out_shape=jax.ShapeDtypeStruct((n, kd, hw), out_dtype),
        grid=grid,
        in_specs=[
            pl.BlockSpec((None, cin, T), lambda b, t: (b, 0, t)),
            pl.BlockSpec((kd, cin), lambda b, t: (0, 0)),
            pl.BlockSpec((kd, 1), lambda b, t: (0, 0)),
        ],
        out_specs=pl.BlockSpec((None, kd, T), lambda b, t: (b, 0, t)),
        compiler_params=pltpu.CompilerParams(
            dimension_semantics=("parallel", "parallel")),
        cost_estimate=cost,
    )(x, w_folded, shift)


def fused_attention_pallas(q, k, v, h, w):
    """q, k: (n, kd, hw); v: (n, c, hw)  (transfer dtype).  Returns (n, c, hw) f32."""
    n, kd, hw = q.shape
    c = v.shape[1]
    assert h * w == hw
    assert h >= 5 and w >= 5, "coordinate-mask boundary test needs h, w >= 5"

    offsets = [(dy, dx) for dy in (-2, 0, 2) for dx in (-2, 0, 2)]
    # neighbour (dy,dx) lives at flat offset s = dy*w+dx; roll by (-s) mod hw so
    # rolled[p] == x[p + s] (jnp.roll semantics; masks self-consistent either way).
    shifts = tuple((-(dy * w + dx)) % hw for dy, dx in offsets)

    coords = np.stack(
        [np.repeat(np.arange(h, dtype=np.float32), w),
         np.tile(np.arange(w, dtype=np.float32), h)], axis=0)          # (2, hw)

    cost = pl.CostEstimate(
        flops=int(n * hw * 9 * (2 * kd + 2 * c + 10)),
        transcendentals=int(n * hw * 10),
        bytes_accessed=int(q.size * q.dtype.itemsize + k.size * k.dtype.itemsize
                           + v.size * v.dtype.itemsize
                           + 4 * n * c * hw + 4 * 2 * hw),
    )
    return pl.pallas_call(
        _make_fused_attn_kernel(shifts),
        out_shape=jax.ShapeDtypeStruct((n, c, hw), jnp.float32),
        grid=(n,),
        in_specs=[
            pl.BlockSpec((2, hw), lambda b: (0, 0)),
            pl.BlockSpec((None, kd, hw), lambda b: (b, 0, 0)),
            pl.BlockSpec((None, kd, hw), lambda b: (b, 0, 0)),
            pl.BlockSpec((None, c, hw), lambda b: (b, 0, 0)),
        ],
        out_specs=pl.BlockSpec((None, c, hw), lambda b: (b, 0, 0)),
        compiler_params=pltpu.CompilerParams(
            dimension_semantics=("parallel",),
            vmem_limit_bytes=_attention_vmem_limit(),
        ),
        cost_estimate=cost,
    )(jnp.asarray(coords), q, k, v)


# --------------------------- JAX glue ----------------------------------------

def _interp_matrix_align_corners(out_size, in_size):
    """(out_size, in_size) matrix implementing 1-D linear interp, align_corners=True."""
    U = np.zeros((out_size, in_size), np.float32)
    if out_size == 1 or in_size == 1:
        U[:, 0] = 1.0
        return U
    pos = np.linspace(0.0, in_size - 1.0, out_size)
    lo = np.minimum(np.floor(pos).astype(np.int64), in_size - 1)
    hi = np.minimum(lo + 1, in_size - 1)
    frac = (pos - lo).astype(np.float32)
    rows = np.arange(out_size)
    np.add.at(U, (rows, lo), 1.0 - frac)
    np.add.at(U, (rows, hi), frac)
    return U


def bilinear_align_corners(x, out_h, out_w):
    # (n, c, h, w) -> (n, c, out_h, out_w) as two MXU-friendly matmuls (no gathers).
    n, c, h, w = x.shape
    Uh = jnp.asarray(_interp_matrix_align_corners(out_h, h))
    Uw = jnp.asarray(_interp_matrix_align_corners(out_w, w))
    x = jnp.einsum("oh,nchw->ncow", Uh, x)
    x = jnp.einsum("pw,nchw->nchp", Uw, x)
    return x


def local_up_forward(c1, c2, out, params, eps=1e-5, transfer_dtype=jnp.bfloat16):
    n, _, h, w = c1.shape
    c = out.shape[1]

    # refine(c1) -> queries, (n, kd, hw) in the transfer dtype
    q = refine_pallas(c1, params["w1"], params["g1"], params["b1"],
                      params["m1"], params["v1"], eps, out_dtype=transfer_dtype)

    # c2 -> bilinear upsample -> refine2 -> keys
    c2u = bilinear_align_corners(c2, h, w)
    k = refine_pallas(c2u, params["w2"], params["g2"], params["b2"],
                      params["m2"], params["v2"], eps, out_dtype=transfer_dtype)

    # out -> bilinear upsample -> values (transfer dtype, flat pixel axis)
    v = bilinear_align_corners(out, h, w).astype(transfer_dtype).reshape(n, c, h * w)

    # fused: dilated 3x3 unfold + softmax attention + aggregation (f32 output)
    y = fused_attention_pallas(q, k, v, h, w)
    return y.reshape(n, c, h, w)


# --------------------------- pure-JAX reference ------------------------------

def unfold_3x3_d2(x):
    # torch.nn.functional.unfold(x, 3, dilation=2, padding=2, stride=1)
    # reshaped / permuted to (n, h*w, 9, c).
    n, c, h, w = x.shape
    xp = jnp.pad(x, ((0, 0), (0, 0), (2, 2), (2, 2)))
    patches = []
    for di in (0, 2, 4):
        for dj in (0, 2, 4):
            patches.append(xp[:, :, di:di + h, dj:dj + w])
    u = jnp.stack(patches, axis=2).reshape(n, c, 9, h * w)
    return jnp.transpose(u, (0, 3, 2, 1))


def local_up_reference(c1, c2, out, params, eps=1e-5, transfer_dtype=jnp.float32):
    def refine_ref(x, W, g, b, m, v):
        y = jnp.einsum("kc,nchw->nkhw", W, x)
        inv = 1.0 / jnp.sqrt(v + eps)
        s = (g * inv).reshape(1, -1, 1, 1)
        sh = (b - m * g * inv).reshape(1, -1, 1, 1)
        return jnp.maximum(y * s + sh, 0.0)

    def quant(x):  # same HBM-transfer rounding as the Pallas path
        return x.astype(transfer_dtype).astype(jnp.float32)

    n, _, h, w = c1.shape
    q = quant(refine_ref(c1, params["w1"], params["g1"], params["b1"],
                         params["m1"], params["v1"]))
    c2u = bilinear_align_corners(c2, h, w)
    k = quant(refine_ref(c2u, params["w2"], params["g2"], params["b2"],
                         params["m2"], params["v2"]))
    k_unf = unfold_3x3_d2(k)                                      # (n, hw, 9, kd)
    q_flat = jnp.transpose(q.reshape(n, -1, h * w), (0, 2, 1))    # (n, hw, kd)
    energy = jnp.einsum("npd,npjd->npj", q_flat, k_unf)
    att = jax.nn.softmax(energy, axis=-1)
    out_u = quant(bilinear_align_corners(out, h, w))
    v_unf = unfold_3x3_d2(out_u)                                  # (n, hw, 9, c)
    o = jnp.einsum("npj,npjc->npc", att, v_unf)
    return jnp.transpose(o, (0, 2, 1)).reshape(n, out.shape[1], h, w)


# --------------------------- main ---------------------------------------------

if __name__ == "__main__":
    key = jax.random.PRNGKey(0)
    n, c1_ch, c2_ch, out_ch = 2, 64, 32, 32       # key_dim = c1_ch // 8 = 8
    h = w = 16
    h2 = w2 = 8
    ks = jax.random.split(key, 8)

    c1 = jax.random.normal(ks[0], (n, c1_ch, h, w), jnp.float32)
    c2 = jax.random.normal(ks[1], (n, c2_ch, h2, w2), jnp.float32)
    out = jax.random.normal(ks[2], (n, out_ch, h2, w2), jnp.float32)

    key_dim = c1_ch // 8
    params = dict(
        w1=0.1 * jax.random.normal(ks[3], (key_dim, c1_ch), jnp.float32),
        g1=1.0 + 0.1 * jax.random.normal(ks[4], (key_dim,), jnp.float32),
        b1=0.05 * jnp.arange(key_dim, dtype=jnp.float32),
        m1=0.02 * jnp.arange(key_dim, dtype=jnp.float32),
        v1=jnp.ones((key_dim,), jnp.float32),
        w2=0.1 * jax.random.normal(ks[5], (key_dim, c2_ch), jnp.float32),
        g2=1.0 + 0.1 * jax.random.normal(ks[6], (key_dim,), jnp.float32),
        b2=-0.05 * jnp.arange(key_dim, dtype=jnp.float32),
        m2=0.01 * jnp.arange(key_dim, dtype=jnp.float32),
        v2=1.5 * jnp.ones((key_dim,), jnp.float32),
    )

    # (1) f32 transfers: tight check against the pure-f32 reference.
    y32 = jax.block_until_ready(
        local_up_forward(c1, c2, out, params, transfer_dtype=jnp.float32))
    assert y32.shape == (n, out_ch, h, w)
    y32_ref = local_up_reference(c1, c2, out, params, transfer_dtype=jnp.float32)
    assert bool(jnp.allclose(y32, y32_ref, atol=1e-3, rtol=1e-3)), (
        "f32 path mismatch: max|diff| = %e" % float(jnp.max(jnp.abs(y32 - y32_ref))))

    # (2) default bf16 HBM transfers, checked against a reference that applies
    #     the same bf16 rounding to q / k / v so the comparison stays tight.
    ybf = jax.block_until_ready(local_up_forward(c1, c2, out, params))
    ybf_ref = local_up_reference(c1, c2, out, params, transfer_dtype=jnp.bfloat16)
    assert bool(jnp.allclose(ybf, ybf_ref, atol=2e-3, rtol=2e-3)), (
        "bf16 path mismatch: max|diff| = %e" % float(jnp.max(jnp.abs(ybf - ybf_ref))))

    print("KERNEL_OK")
</pallas_src>

<mosaic_0001>
module attributes {stable_mosaic.version = 11 : i64} {
  func.func @_refine_kernel(%arg0: i32, %arg1: i32, %arg2: memref<1x64x256xf32, #tpu.memory_space<vmem>>, %arg3: memref<8x64xf32, #tpu.memory_space<vmem>>, %arg4: memref<8x1xf32, #tpu.memory_space<vmem>>, %arg5: memref<1x8x256xf32, #tpu.memory_space<vmem>>) attributes {dimension_semantics = [#tpu.dimension_semantics<parallel>, #tpu.dimension_semantics<parallel>], iteration_bounds = array<i64: 2, 1>, scalar_prefetch = 0 : i64, scratch_operands = 0 : i64, tpu.core_type = #tpu.core_type<tc>, window_params = [{transform_indices = @transform_0, window_bounds = array<i64: 1, 64, 256>}, {pipeline_mode = #tpu.pipeline_mode<synchronous>, transform_indices = @transform_1, window_bounds = array<i64: 8, 64>}, {pipeline_mode = #tpu.pipeline_mode<synchronous>, transform_indices = @transform_2, window_bounds = array<i64: 8, 1>}, {transform_indices = @transform_3, window_bounds = array<i64: 1, 8, 256>}]} {
    %c0 = arith.constant 0 : index
    %c0_0 = arith.constant 0 : index
    %0 = vector.load %arg3[%c0, %c0_0] : memref<8x64xf32, #tpu.memory_space<vmem>>, vector<8x64xf32>
    %c0_1 = arith.constant 0 : index
    %c0_2 = arith.constant 0 : index
    %c0_3 = arith.constant 0 : index
    %1 = vector.load %arg2[%c0_1, %c0_2, %c0_3] : memref<1x64x256xf32, #tpu.memory_space<vmem>>, vector<1x64x256xf32>
    %2 = vector.shape_cast %1 : vector<1x64x256xf32> to vector<64x256xf32>
    %cst = arith.constant dense<0.000000e+00> : vector<8x256xf32>
    %3 = tpu.matmul %0, %2, %cst {dimension_numbers = #tpu.dot_dimension_numbers<[1], [0], [0], [1], [0, 0, 1, 1], [], []>} : vector<8x64xf32>, vector<64x256xf32>, vector<8x256xf32> -> vector<8x256xf32>
    %c0_4 = arith.constant 0 : index
    %c0_5 = arith.constant 0 : index
    %4 = vector.load %arg4[%c0_4, %c0_5] : memref<8x1xf32, #tpu.memory_space<vmem>>, vector<8x1xf32>
    %5 = vector.broadcast %4 : vector<8x1xf32> to vector<8x256xf32>
    %6 = arith.addf %3, %5 : vector<8x256xf32>
    %cst_6 = arith.constant 0.000000e+00 : f32
    %7 = vector.broadcast %cst_6 : f32 to vector<8x256xf32>
    %8 = arith.maximumf %6, %7 : vector<8x256xf32>
    %c0_7 = arith.constant 0 : index
    %c0_8 = arith.constant 0 : index
    %c0_9 = arith.constant 0 : index
    %9 = vector.load %arg5[%c0_7, %c0_8, %c0_9] : memref<1x8x256xf32, #tpu.memory_space<vmem>>, vector<1x8x256xf32>
    %10 = vector.shape_cast %9 : vector<1x8x256xf32> to vector<8x256xf32>
    %11 = vector.shape_cast %8 : vector<8x256xf32> to vector<1x8x256xf32>
    tpu.vector_store %arg5[%c0_7, %c0_8, %c0_9], %11 {strides = array<i32>} : memref<1x8x256xf32, #tpu.memory_space<vmem>>, vector<1x8x256xf32>,
    return
  }
  func.func @transform_0(%arg0: i32, %arg1: i32) -> (i32, i32, i32) {
    %c0_i32 = arith.constant 0 : i32
    %c0_i32_0 = arith.constant 0 : i32
    return %arg0, %c0_i32, %arg1 : i32, i32, i32
  }
  func.func @transform_1(%arg0: i32, %arg1: i32) -> (i32, i32) {
    %c0_i32 = arith.constant 0 : i32
    %c0_i32_0 = arith.constant 0 : i32
    %c0_i32_1 = arith.constant 0 : i32
    return %c0_i32, %c0_i32_0 : i32, i32
  }
  func.func @transform_2(%arg0: i32, %arg1: i32) -> (i32, i32) {
    %c0_i32 = arith.constant 0 : i32
    %c0_i32_0 = arith.constant 0 : i32
    %c0_i32_1 = arith.constant 0 : i32
    return %c0_i32, %c0_i32_0 : i32, i32
  }
  func.func @transform_3(%arg0: i32, %arg1: i32) -> (i32, i32, i32) {
    %c0_i32 = arith.constant 0 : i32
    %c0_i32_0 = arith.constant 0 : i32
    return %arg0, %c0_i32, %arg1 : i32, i32, i32
  }
}

</mosaic_0001>

<bundles_post_ra>
// kernel: tpu_custom_call.1
= control target key start
LH: loop header
LB: loop body
LE: loop exit
PB: predicated region body
PF: predicated region fallthrough
CT: control target
= control target key end

     0   :  { %8 = vsyncpa [#allocation3], 0  ;;  %s851_s0 = inlined_call_operand.hbm [shape: f32[2,64,256], index: 0, kind: input, shape index: {}]   ;;  %s852_s1 = inlined_call_operand.vmem [shape: f32[8,64], index: 1, kind: input, shape index: {}]   ;;  %s853_s2 = inlined_call_operand.vmem [shape: f32[8,1], index: 2, kind: input, shape index: {}]   ;;  %s854_s3 = inlined_call_operand.hbm [shape: f32[2,8,256], index: 3, kind: output, shape index: {}]  }
   0x1   :  { %10 = vsyncpa [#allocation3 + $0x1], 0 }
   0x2   :  { %11 = vsyncpa [#allocation4], 0 }
   0x3   :  { %13 = vsyncpa [#allocation4 + $0x1], 0  ;;  %s653_s12 = smov 0   ;;  %s655_s13 = smov 0  }
   0x4   :  { %s657_s14 = smov 0   ;;  %s659_s15 = smov 0  }
   0x5   :  { %s661_s16 = smov 0   ;;  %s663_s17 = smov 0  }
   0x6 LB: > { %s412_s18 = sadd.s32 4294967295, %s625_s17   ;;  %s413_s19 = sadd.s32 4294967294, %s625_s17   ;;  %s625_s17 = sphi %s663_s17, %s19_s17   ;;  %s621_s16 = sphi %s661_s16, %s869_s16   ;;  %s617_s15 = sphi %s659_s15, %s868_s15   ;;  %s613_s14 = sphi %s657_s14, %s867_s14   ;;  %s609_s13 = sphi %s655_s13, %s866_s13   ;;  %s605_s12 = sphi %s653_s12, %s865_s12  }
   0x7   : > { %s31_s20 = sadd.s32 1, %s621_s16  ;;  %s40_s21 = sadd.s32 1, %s613_s14 }
   0x8   : > { %p33_p0 = scmp.ge.s32.totalorder %s31_s20, 2  ;;  %p47_p1 = scmp.ne.s32.totalorder %s613_s14, %s609_s13 }
   0x9   : > { %p48_p2 = scmp.eq.s32.totalorder %s625_s17, 0  ;;  %p53_p3 = scmp.ne.s32.totalorder %s609_s13, %s605_s12 }
   0xa   : > { %s871_s20 = smov (%p33_p0, %s31_s20), 0  ;;  %p54_p5 = scmp.eq.s32.totalorder %s412_s18, 0 }
   0xb   : > { %p694_p4 = por %p48_p2, %p47_p1  ;;  %s35_s23 = ssub.s32 %s621_s16, %s871_s20 }
   0xc   : > { %p121_p6 = scmp.eq.s32.totalorder %s412_s18, 1  ;;  %p38_p7 = scmp.eq.s32.totalorder %s35_s23, 0 }
   0xd   : > { %p700_p8 = por %p54_p5, %p53_p3  ;;  %p127_p10 = scmp.eq.s32.totalorder %s413_s19, 1 }
   0xe   : > { %p704_p9 = por %p121_p6, %p47_p1  ;;  %p458_p13 = scmp.lt.s32.totalorder %s625_s17, 2 }
   0xf   : > { %s709_s26 = scalar_select %p38_p7, %s613_s14, %s40_s21  }
  0x10   : > { %s858_s25 = scalar_select %p704_p9, 1, 0 }
  0x11   : > { %p711_p11 = por %p127_p10, %p53_p3  ;;  %s153_s28 = sand.u32 1, %s613_s14  }
  0x12   : > { %s416_s29 = sshll.u32 %s153_s28, 7  ;;  %s428_s30 = sshll.u32 %s621_s16, 11 }
  0x13   : > { %s859_s27 = scalar_select %p711_p11, 1, 0 }
  0x14   : > { %s722_s6 = scalar_lea.hbm %s851_s0, %s428_s30  ;;  %s157_s7 = scalar_lea.vmem [#allocation2], %s416_s29 }
  0x15   : > { %s166_s8 = sshll.u32 %s157_s7, 4  ;;  %p728_p0 = pnand %p458_p13, %p694_p4  ;;  %s724_s8 = int_to_ptr.vmem [resolvable:$true] %s166_s8 }
  0x16   : > { %s733_s10 = scalar_lea.sflag [#allocation3], %s153_s28  ;;  %s513_s11 = scalar_lea.hbm %s722_s6, 2048 }
  0x17   : > { %p514_p2 = scmp.ne.s32.totalorder %s722_s6, %s513_s11  ;;  %p515_p3 = pneg %p728_p0 }
  0x18   : > { %s518_s21 = scalar_lea.hbm %s851_s0, 4096  ;;  %p519_p4 = scmp.lt.u32.totalorder %s722_s6, %s851_s0 }
  0x19   : > { %p516_p5 = pnand %p515_p3, %p514_p2  ;;  %p520_p7 = scmp.lt.u32.totalorder %s518_s21, %s513_s11 }
  0x1a   : > { %p522_p13 = scmp.lt.u32.totalorder %s513_s11, %s722_s6 }
  0x1b   : > { %p517_p6 = pneg %p516_p5  ;;  %p521_p10 = por %p520_p7, %p519_p4 }
  0x1d   : > { %p523_p12 = por %p522_p13, %p521_p10 }
  0x1f   : > { %p524_p1 = pnand %p523_p12, %p517_p6 }
  0x21   : > { %527 = shalt.err (!%p524_p1)
}
  0x22   : > { %s528_s28 = scalar_lea.vmem %s724_s8, 2048  ;;  %s627_s29 = smov [#allocation2]  }
  0x23   : > { %p529_p2 = scmp.ne.s32.totalorder %s724_s8, %s528_s28  ;;  %s533_s30 = sshll.u32 %s627_s29, 4  ;;  %s534_s30 = int_to_ptr.vmem [resolvable:$false] %s533_s30 }
  0x24   : > { %s535_s4 = scalar_lea.vmem %s534_s30, 4096  ;;  %p536_p9 = scmp.lt.s32.totalorder %s724_s8, %s534_s30 }
  0x25   : > { %p531_p5 = pnand %p529_p2, %p515_p3  ;;  %p537_p4 = scmp.lt.s32.totalorder %s535_s4, %s528_s28 }
  0x27   : > { %p532_p11 = pneg %p531_p5  ;;  %p538_p7 = por %p537_p4, %p536_p9 }
  0x29   : > { %p539_p10 = pnand %p538_p7, %p532_p11 }
  0x2b   : > { %542 = shalt.err (!%p539_p10)
}
  0x2c   : > { %s628_s5 = smov 256   ;;  %s629_s7 = smov 16  }
  0x2d   : > { %453 = dma.hbm_to_vmem [thread:$0]  (!%p728_p0), %s722_s6, 2048, %s724_s8, %s733_s10, %s628_s5, %s628_s5, %s629_s7  }
  0x2e   : > { %p174_p12 = scmp.lt.s32.totalorder %s625_s17, 3  ;;  %p861_p1 = scmp.ge.s32.totalorder %s625_s17, 1 }
  0x30   : > { %p175_p3 = pnand %p861_p1, %p174_p12 }
  0x31   : > { %s765_s11 = sand.u32 (!%p175_p3), 1, %s609_s13  }
  0x32   : > { %178 = sbr.rel (%p175_p3) target bundleno = 308 (0x134), region = 32  ;;  %s420_s18 = sshll.u32 (!%p175_p3), %s765_s11, 7 }
  0x33   : > { %s181_s19 = scalar_lea.sflag (!%p175_p3), [#allocation3], %s765_s11  ;;  %s769_s21 = scalar_lea.vmem (!%p175_p3), [#allocation2], %s420_s18 }
  0x39   : > { %596 = dma.done.wait (%p700_p8), %s181_s19, 2048  }
  0x3a   : > { %598 = vsyncadd (%p700_p8), %s181_s19, 4294965248  ;;  %v630_v0 = vmov 0.0   ;;  %v631_v1 = vmov 0   ;;  %v211_v2 = vld [vmem:[%s769_s21 + $0x8] sm:$0xff]  ;;  %v213_v3 = vld [vmem:[%s769_s21 + $0x18] sm:$0xff]  ;;  %vm232_vm0 = vcmask 523264  }
  0x3b   : > { %300 = vmatprep.mubr.f32.mxu0 %v630_v0  ;;  %512 = vset.pattern.permute.xlu0 %v631_v1  ;;  %v210_v4 = vld [vmem:[%s769_s21] sm:$0xff]  ;;  %v430_v5 = vpack.c.bf16 %v213_v3, %v211_v2  ;;  %v212_v6 = vld [vmem:[%s769_s21 + $0x10] sm:$0xff]  ;;  %v215_v7 = vld [vmem:[%s769_s21 + $0x28] sm:$0xff]  ;;  %s421_s10 = sshll.u32 %s765_s11, 4  ;;  %s429_s22 = sshll.u32 %s617_s15, 8 }
  0x3c   : > { %v217_v8 = vld [vmem:[%s769_s21 + $0x38] sm:$0xff]  ;;  %v432_v9 = vpack.c.bf16 %v212_v6, %v210_v4  ;;  %v214_v11 = vld [vmem:[%s769_s21 + $0x20] sm:$0xff]  ;;  %v216_v12 = vld [vmem:[%s769_s21 + $0x30] sm:$0xff]  ;;  %s206_s23 = scalar_lea.vmem [#allocation5], %s421_s10  ;;  %s802_s4 = scalar_lea.hbm %s854_s3, %s429_s22 }
  0x3d   : > { %v434_v10 = vpack.c.bf16 %v217_v8, %v215_v7  ;;  %v219_v13 = vld [vmem:[%s769_s21 + $0x48] sm:$0xff]  ;;  %431 = vmatprep.subr.bf16.mxu0 %v430_v5  ;;  %v221_v14 = vld [vmem:[%s769_s21 + $0x58] sm:$0xff]  ;;  %v436_v15 = vpack.c.bf16 %v216_v12, %v214_v11  ;;  %v218_v17 = vld [vmem:[%s769_s21 + $0x40] sm:$0xff]  ;;  %s328_s28 = sshll.u32 %s206_s23, 4  ;;  %s312_s5 = scalar_lea.sflag [#allocation4], %s765_s11  ;;  %s804_s28 = int_to_ptr.vmem [resolvable:$true] %s328_s28 }
  0x3e   : > { %433 = vmatpush1.bf16.msra.mxu0 %v432_v9  ;;  %v438_v16 = vpack.c.bf16 %v221_v14, %v219_v13  ;;  %v220_v18 = vld [vmem:[%s769_s21 + $0x50] sm:$0xff]  ;;  %v226_v19 = vld [vmem:[%s853_s2] sm:$0xff]  ;;  %v223_v20 = vld [vmem:[%s769_s21 + $0x68] sm:$0xff]  ;;  %s543_s7 = scalar_lea.vmem %s804_s28, 256  ;;  %p862_p9 = scmp.ne.s32.totalorder %s858_s25, 0 }
  0x3f   : > { %435 = vmatprep.subr.bf16.mxu0 %v434_v10  ;;  %v225_v21 = vld [vmem:[%s769_s21 + $0x78] sm:$0xff]  ;;  %229 = vperm.xlu0 %512, %v226_v19   ;;  %v440_v22 = vpack.c.bf16 %v220_v18, %v218_v17  ;;  %v222_v24 = vld [vmem:[%s769_s21 + $0x60] sm:$0xff]  ;;  %v224_v25 = vld [vmem:[%s769_s21 + $0x70] sm:$0xff]  ;;  %p544_p8 = scmp.ne.s32.totalorder %s804_s28, %s543_s7  ;;  %s632_s15 = smov [#allocation5]  }
  0x40   : > { %v442_v23 = vpack.c.bf16 %v225_v21, %v223_v20  ;;  %v444_v26 = vpack.c.bf16 %v224_v25, %v222_v24  ;;  %v209_v27 = vld [vmem:[%s852_s1] sm:$0xff]  ;;  %s547_s18 = sshll.u32 %s632_s15, 4  ;;  %s548_s18 = int_to_ptr.vmem [resolvable:$false] %s547_s18 }
  0x41   : > { %p545_p11 = pnand %p544_p8, %p862_p9  ;;  %s549_s19 = scalar_lea.vmem %s548_s18, 512 }
  0x42   : > { %437 = vmatpush1.bf16.msra.mxu0 %v436_v15  ;;  %p550_p6 = scmp.lt.s32.totalorder %s804_s28, %s548_s18  ;;  %p551_p13 = scmp.lt.s32.totalorder %s549_s19, %s543_s7 }
  0x43   : > { %439 = vmatprep.subr.bf16.mxu0 %v438_v16  ;;  %p546_p0 = pneg %p545_p11 }
  0x44   : > { %p552_p2 = por %p551_p13, %p550_p6 }
  0x46   : > { %441 = vmatpush1.bf16.msra.mxu0 %v440_v22  ;;  %p553_p5 = pnand %p552_p2, %p546_p0 }
  0x47   : > { %443 = vmatprep.subr.bf16.mxu0 %v442_v23 }
  0x4a   : > { %445 = vmatpush1.bf16.msra.mxu0 %v444_v26 }
  0x4d   : > { %422 = vmatmul.mubr.msk.f32.vlgmr.msra.gmra.mrb[0].mxu0 %vm232_vm0, %v209_v27 }
  0xbe   : > { %v230_v28 = vpop.permute.xlu0 %229 }
 0x120   : > { %v302_v29 = vpop.f32.mrb[0].mxu0 }
 0x121   : > { %v303_v30 = vadd.f32 %v302_v29, %v230_v28  ;;  %v304_v31 = vpop.f32.mrb[1].mxu0 }
 0x122   : > { %v305_v32 = vadd.f32 %v304_v31, %v230_v28 }
 0x123   : > { %v307_v33 = vmax.f32 %v303_v30, 0.0 }
 0x124   : > { %v308_v34 = vmax.f32 %v305_v32, 0.0 }
 0x125   : > { %309 = vst [vmem:[%s206_s23] sm:$0xff] %v307_v33 }
 0x126   : > { %310 = vst [vmem:[%s206_s23 + $0x8] sm:$0xff] %v308_v34 }
 0x127   : > { %556 = shalt.err (!%p553_p5)
}
 0x128   : > { %s557_s11 = scalar_lea.hbm %s802_s4, 256  ;;  %s561_s6 = scalar_lea.hbm %s854_s3, 512 }
 0x129   : > { %p558_p4 = scmp.ne.s32.totalorder %s802_s4, %s557_s11  ;;  %p562_p12 = scmp.lt.u32.totalorder %s802_s4, %s854_s3 }
 0x12a   : > { %p563_p1 = scmp.lt.u32.totalorder %s561_s6, %s557_s11  ;;  %p565_p8 = scmp.lt.u32.totalorder %s557_s11, %s802_s4 }
 0x12b   : > { %p559_p7 = pnand %p558_p4, %p862_p9 }
 0x12c   : > { %p564_p3 = por %p563_p1, %p562_p12 }
 0x12d   : > { %p560_p10 = pneg %p559_p7 }
 0x12e   : > { %p566_p11 = por %p565_p8, %p564_p3 }
 0x130   : > { %p567_p0 = pnand %p566_p11, %p560_p10 }
 0x132   : > { %570 = shalt.err (!%p567_p0)
}
 0x133   : > { %448 = dma.vmem_to_hbm [thread:$0]  (%p862_p9), %s804_s28, 256, %s802_s4, %s312_s5  }
 0x134 PF: > { %s340_s10 = sand.u32 1, %s605_s12   ;;  %p863_p6 = scmp.ne.s32.totalorder %s859_s27, 0 }
 0x135   : > { %p864_p13 = scmp.ge.s32.totalorder %s625_s17, 2  ;;  %s341_s22 = scalar_lea.sflag [#allocation4], %s340_s10 }
 0x137   : > { %p455_p2 = pnand %p864_p13, %p863_p6 }
 0x139   : > { %600 = dma.done.wait (!%p455_p2), %s341_s22, 256  }
 0x13a   : > { %602 = vsyncadd (!%p455_p2), %s341_s22, 4294967040  ;;  %s19_s17 = sadd.s32 1, %s625_s17   ;;  %s865_s12 = smov %s609_s13 }
 0x13b   : > { %p16_p5 = scmp.ge.s32.totalorder %s19_s17, 4   ;;  %s866_s13 = smov %s613_s14 }
 0x13c   : > { %s867_s14 = smov %s709_s26  ;;  %s868_s15 = smov %s621_s16 }
 0x13d   : > { %s869_s16 = smov %s871_s20  ;;  %18 = sbr.rel (!%p16_p5) target bundleno = 6 (0x6), region = 77 }
 0x144   :  { %346 = vsyncpa [#allocation3], 1 }
 0x145   :  { %348 = vsyncpa [#allocation3 + $0x1], 1 }
 0x146   :  { %349 = vsyncpa [#allocation4], 1 }
 0x147   :  { %351 = vsyncpa [#allocation4 + $0x1], 1 }

</bundles_post_ra>
